<compile_context>
chip_gen: v5e
topology: v5e:2x2
jax: 0.10.0
libtpu: 0.0.40
codegen_flags: <defaults>
</compile_context>

<pallas_src>
import jax
import jax.numpy as jnp
from jax.experimental import pallas as pl
from jax.experimental.pallas import tpu as pltpu


def _classhead_kernel(x_ref, w_ref, b_ref, o_ref):
    # x_ref: (C, tile_hw)       activations, native NCHW layout (spatial pixels on lanes)
    # w_ref: (out_ch, C)        1x1-conv weights (constant index_map -> resident, no re-DMA)
    # b_ref: (out_ch, 1)        bias, broadcast along lanes
    # o_ref: (out_ch, tile_hw)  lane-dense store (tile_hw on lanes)
    acc = jnp.dot(w_ref[...], x_ref[...], preferred_element_type=jnp.float32)
    o_ref[...] = (acc + b_ref[...].astype(jnp.float32)).astype(o_ref.dtype)


def _pick_tile_hw(hw: int, n: int, max_tile: int = 2048) -> int:
    """Spatial tile: big (fewer grid steps, longer DMAs), multiple of 128 (lane-dense),
    and — when N == 1 — small enough that the grid has >= 2 blocks so both v7x
    TensorCores get work.  2048*512*4 B = 4 MiB per input block, double-buffered 8 MiB:
    comfortably inside scoped VMEM on every gen."""
    if hw <= 128:
        return hw                      # full extent (block == array dim is always legal)
    tile = min(max_tile, (hw // 128) * 128)
    if n == 1:
        half = -(-hw // 2)             # cdiv(hw, 2)
        half = -(-half // 128) * 128   # round up to a multiple of 128
        tile = min(tile, max(128, half))
    return tile


def class_head_forward(x: jax.Array, weight: jax.Array, bias: jax.Array,
                       num_anchors: int = 3) -> jax.Array:
    """Pallas implementation of ClassHead.forward.

    x:      (N, C, H, W)        NCHW, matching the PyTorch conv input layout
    weight: (out_ch, C, 1, 1)   1x1 conv weight, out_ch = num_anchors * 2
    bias:   (out_ch,)
    returns (N, H*W*num_anchors, 2)
    """
    N, C, H, W = x.shape
    out_ch = weight.shape[0]
    assert out_ch == num_anchors * 2, (
        f"weight out_channels ({out_ch}) must equal num_anchors*2 ({num_anchors * 2})")
    HW = H * W

    # Free reshapes only — no transpose of the dominant tensor.
    x3 = x.reshape(N, C, HW)
    w2d = weight.reshape(out_ch, C)
    b2d = bias.reshape(out_ch, 1)

    tile_hw = _pick_tile_hw(HW, N)
    grid = (N, pl.cdiv(HW, tile_hw))

    # Tail-tile invariant: the last HW tile may read out-of-bounds (padded) columns of x3;
    # this is safe ONLY because every output column depends solely on its own input column
    # and padded output columns are masked on store.  Do not add column-wise reductions.
    itemsize = jnp.dtype(x.dtype).itemsize
    cost = pl.CostEstimate(
        flops=2 * N * HW * C * out_ch,
        transcendentals=0,
        bytes_accessed=(N * C * HW * itemsize            # x
                        + N * out_ch * HW * itemsize     # out
                        + out_ch * C * itemsize          # weight
                        + out_ch * itemsize),            # bias
    )

    out3 = pl.pallas_call(
        _classhead_kernel,
        out_shape=jax.ShapeDtypeStruct((N, out_ch, HW), x.dtype),
        grid_spec=pl.GridSpec(
            grid=grid,
            in_specs=[
                pl.BlockSpec((None, C, tile_hw), lambda n, j: (n, 0, j)),
                pl.BlockSpec((out_ch, C), lambda n, j: (0, 0)),
                pl.BlockSpec((out_ch, 1), lambda n, j: (0, 0)),
            ],
            out_specs=pl.BlockSpec((None, out_ch, tile_hw), lambda n, j: (n, 0, j)),
        ),
        compiler_params=pltpu.CompilerParams(
            dimension_semantics=("parallel", "parallel"),
        ),
        cost_estimate=cost,
    )(x3, w2d, b2d)

    # Layout plumbing on the small 6-channel output only:
    # (N, out_ch, HW) -> (N, HW, out_ch) -> (N, HW*num_anchors, 2),
    # which matches permute(0,2,3,1).contiguous().view(N, -1, 2) exactly
    # (HW is flattened in row-major h*W + w order in both).
    return jnp.transpose(out3, (0, 2, 1)).reshape(N, HW * num_anchors, 2)


if __name__ == "__main__":
    key = jax.random.PRNGKey(0)
    k1, k2, k3 = jax.random.split(key, 3)

    # Small shapes consistent with ClassHead: NCHW input, scaled-down inchannels.
    N, C, H, W = 2, 128, 8, 8
    num_anchors = 3
    out_ch = num_anchors * 2

    x = jax.random.normal(k1, (N, C, H, W), dtype=jnp.float32)
    weight = jax.random.normal(k2, (out_ch, C, 1, 1), dtype=jnp.float32) * 0.05
    bias = jax.random.normal(k3, (out_ch,), dtype=jnp.float32)

    y = class_head_forward(x, weight, bias, num_anchors=num_anchors)
    jax.block_until_ready(y)

    # Pure-JAX reference: 1x1 conv (per-pixel matmul) + permute + reshape.
    ref = jnp.einsum("nchw,oc->nhwo", x, weight.reshape(out_ch, C)) + bias
    ref = ref.reshape(N, H * W * num_anchors, 2)

    assert y.shape == (N, H * W * num_anchors, 2)
    assert y.dtype == x.dtype
    assert bool(jnp.allclose(y, ref, atol=1e-4, rtol=1e-4))

    print("KERNEL_OK")
</pallas_src>

<mosaic_0001>
module attributes {stable_mosaic.version = 11 : i64} {
  func.func @_classhead_kernel(%arg0: i32, %arg1: i32, %arg2: memref<1x128x64xf32, #tpu.memory_space<vmem>>, %arg3: memref<6x128xf32, #tpu.memory_space<vmem>>, %arg4: memref<6x1xf32, #tpu.memory_space<vmem>>, %arg5: memref<1x6x64xf32, #tpu.memory_space<vmem>>) attributes {dimension_semantics = [#tpu.dimension_semantics<parallel>, #tpu.dimension_semantics<parallel>], iteration_bounds = array<i64: 2, 1>, scalar_prefetch = 0 : i64, scratch_operands = 0 : i64, tpu.core_type = #tpu.core_type<tc>, window_params = [{transform_indices = @transform_0, window_bounds = array<i64: 1, 128, 64>}, {pipeline_mode = #tpu.pipeline_mode<synchronous>, transform_indices = @transform_1, window_bounds = array<i64: 6, 128>}, {pipeline_mode = #tpu.pipeline_mode<synchronous>, transform_indices = @transform_2, window_bounds = array<i64: 6, 1>}, {transform_indices = @transform_3, window_bounds = array<i64: 1, 6, 64>}]} {
    %c0 = arith.constant 0 : index
    %c0_0 = arith.constant 0 : index
    %0 = vector.load %arg3[%c0, %c0_0] : memref<6x128xf32, #tpu.memory_space<vmem>>, vector<6x128xf32>
    %c0_1 = arith.constant 0 : index
    %c0_2 = arith.constant 0 : index
    %c0_3 = arith.constant 0 : index
    %1 = vector.load %arg2[%c0_1, %c0_2, %c0_3] : memref<1x128x64xf32, #tpu.memory_space<vmem>>, vector<1x128x64xf32>
    %2 = vector.shape_cast %1 : vector<1x128x64xf32> to vector<128x64xf32>
    %cst = arith.constant dense<0.000000e+00> : vector<6x64xf32>
    %3 = tpu.matmul %0, %2, %cst {dimension_numbers = #tpu.dot_dimension_numbers<[1], [0], [0], [1], [0, 0, 1, 1], [], []>} : vector<6x128xf32>, vector<128x64xf32>, vector<6x64xf32> -> vector<6x64xf32>
    %c0_4 = arith.constant 0 : index
    %c0_5 = arith.constant 0 : index
    %4 = vector.load %arg4[%c0_4, %c0_5] : memref<6x1xf32, #tpu.memory_space<vmem>>, vector<6x1xf32>
    %5 = vector.broadcast %4 : vector<6x1xf32> to vector<6x64xf32>
    %6 = arith.addf %3, %5 : vector<6x64xf32>
    %c0_6 = arith.constant 0 : index
    %c0_7 = arith.constant 0 : index
    %c0_8 = arith.constant 0 : index
    %7 = vector.load %arg5[%c0_6, %c0_7, %c0_8] : memref<1x6x64xf32, #tpu.memory_space<vmem>>, vector<1x6x64xf32>
    %8 = vector.shape_cast %7 : vector<1x6x64xf32> to vector<6x64xf32>
    %9 = vector.shape_cast %6 : vector<6x64xf32> to vector<1x6x64xf32>
    tpu.vector_store %arg5[%c0_6, %c0_7, %c0_8], %9 {strides = array<i32>} : memref<1x6x64xf32, #tpu.memory_space<vmem>>, vector<1x6x64xf32>,
    return
  }
  func.func @transform_0(%arg0: i32, %arg1: i32) -> (i32, i32, i32) {
    %c0_i32 = arith.constant 0 : i32
    %c0_i32_0 = arith.constant 0 : i32
    return %arg0, %c0_i32, %arg1 : i32, i32, i32
  }
  func.func @transform_1(%arg0: i32, %arg1: i32) -> (i32, i32) {
    %c0_i32 = arith.constant 0 : i32
    %c0_i32_0 = arith.constant 0 : i32
    %c0_i32_1 = arith.constant 0 : i32
    return %c0_i32, %c0_i32_0 : i32, i32
  }
  func.func @transform_2(%arg0: i32, %arg1: i32) -> (i32, i32) {
    %c0_i32 = arith.constant 0 : i32
    %c0_i32_0 = arith.constant 0 : i32
    %c0_i32_1 = arith.constant 0 : i32
    return %c0_i32, %c0_i32_0 : i32, i32
  }
  func.func @transform_3(%arg0: i32, %arg1: i32) -> (i32, i32, i32) {
    %c0_i32 = arith.constant 0 : i32
    %c0_i32_0 = arith.constant 0 : i32
    return %arg0, %c0_i32, %arg1 : i32, i32, i32
  }
}

</mosaic_0001>

<bundles_post_ra>
// kernel: tpu_custom_call.1
= control target key start
LH: loop header
LB: loop body
LE: loop exit
PB: predicated region body
PF: predicated region fallthrough
CT: control target
= control target key end

     0   :  { %s404_s12 = smov 0   ;;  %s406_s13 = smov 0   ;;  %s465_s0 = inlined_call_operand.vmem [shape: f32[2,128,64], index: 0, kind: input, shape index: {}]   ;;  %s466_s1 = inlined_call_operand.vmem [shape: f32[6,128], index: 1, kind: input, shape index: {}]   ;;  %s467_s2 = inlined_call_operand.vmem [shape: f32[6,1], index: 2, kind: input, shape index: {}]   ;;  %s468_s3 = inlined_call_operand.vmem [shape: f32[2,6,64], index: 3, kind: output, shape index: {}]  }
   0x1   :  { %s408_s14 = smov 0  }
   0x2 LB: > { %s25_s15 = sadd.s32 1, %s377_s13  ;;  %p326_p0 = scmp.ge.s32.totalorder %s381_s14, 1  ;;  %s381_s14 = sphi %s408_s14, %s13_s14   ;;  %s377_s13 = sphi %s406_s13, %s470_s13   ;;  %s373_s12 = sphi %s404_s12, %s469_s12  }
   0x3   : > { %p27_p1 = scmp.ge.s32.totalorder %s25_s15, 2  ;;  %p156_p2 = scmp.lt.s32.totalorder %s381_s14, 3 }
   0x5   : > { %s472_s15 = smov (%p27_p1, %s25_s15), 0  ;;  %p157_p3 = pnand %p326_p0, %p156_p2 }
   0x6   : > { %p185_p4 = scmp.lt.s32.totalorder (!%p157_p3), %s373_s12, 1 }
   0x7   : > { %160 = sbr.rel (%p157_p3) target bundleno = 176 (0xb0), region = 32 }
   0xc   : > { %s474_s12 = smov (!%p185_p4, %s373_s12), 1  ;;  %v383_v2 = vmov 0   ;;  %v217_v5 = vld [vmem:[%s467_s2] sm:$0x3f]  ;;  %vm243_vm0 = vcmask 521216  }
   0xd   : > { %s332_s16 = sshll.u32 %s474_s12, 7  ;;  %358 = vset.pattern.permute.xlu0 %v383_v2  ;;  %v200_v18 = vld [vmem:[%s466_s1] sm:$0x3f]  ;;  %s329_s24 = sshll.u32 %s474_s12, 3 }
   0xe   : > { %s428_s19 = scalar_lea.vmem %s465_s0, %s332_s16  ;;  %220 = vperm.xlu0 %358, %v217_v5   ;;  %s199_s27 = scalar_lea.vmem %s468_s3, %s329_s24 }
   0xf   : > { %v216_v0 = vld [vmem:[%s428_s19 + $0x78] sm:$0xff]  ;;  %v215_v1 = vld [vmem:[%s428_s19 + $0x70] sm:$0xff]  ;;  %v214_v3 = vld [vmem:[%s428_s19 + $0x68] sm:$0xff] }
  0x10   : > { %223 = vmatpush.msra.mxu0 %v216_v0  ;;  %v213_v4 = vld [vmem:[%s428_s19 + $0x60] sm:$0xff]  ;;  %v212_v6 = vld [vmem:[%s428_s19 + $0x58] sm:$0xff]  ;;  %v211_v7 = vld [vmem:[%s428_s19 + $0x50] sm:$0xff] }
  0x11   : > { %v210_v8 = vld [vmem:[%s428_s19 + $0x48] sm:$0xff]  ;;  %v209_v9 = vld [vmem:[%s428_s19 + $0x40] sm:$0xff]  ;;  %v208_v10 = vld [vmem:[%s428_s19 + $0x38] sm:$0xff] }
  0x12   : > { %224 = vmatpush.msra.mxu0 %v215_v1  ;;  %v207_v11 = vld [vmem:[%s428_s19 + $0x30] sm:$0xff]  ;;  %v206_v12 = vld [vmem:[%s428_s19 + $0x28] sm:$0xff]  ;;  %v205_v13 = vld [vmem:[%s428_s19 + $0x20] sm:$0xff] }
  0x13   : > { %v204_v14 = vld [vmem:[%s428_s19 + $0x18] sm:$0xff]  ;;  %v203_v15 = vld [vmem:[%s428_s19 + $0x10] sm:$0xff]  ;;  %v202_v16 = vld [vmem:[%s428_s19 + $0x8] sm:$0xff] }
  0x14   : > { %225 = vmatpush.msra.mxu0 %v214_v3  ;;  %v201_v17 = vld [vmem:[%s428_s19] sm:$0xff] }
  0x16   : > { %226 = vmatpush.msra.mxu0 %v213_v4 }
  0x18   : > { %227 = vmatpush.msra.mxu0 %v212_v6 }
  0x1a   : > { %228 = vmatpush.msra.mxu0 %v211_v7 }
  0x1c   : > { %229 = vmatpush.msra.mxu0 %v210_v8 }
  0x1e   : > { %230 = vmatpush.msra.mxu0 %v209_v9 }
  0x20   : > { %231 = vmatpush.msra.mxu0 %v208_v10 }
  0x22   : > { %232 = vmatpush.msra.mxu0 %v207_v11 }
  0x24   : > { %233 = vmatpush.msra.mxu0 %v206_v12 }
  0x26   : > { %234 = vmatpush.msra.mxu0 %v205_v13 }
  0x28   : > { %235 = vmatpush.msra.mxu0 %v204_v14 }
  0x2a   : > { %236 = vmatpush.msra.mxu0 %v203_v15 }
  0x2c   : > { %237 = vmatpush.msra.mxu0 %v202_v16 }
  0x2e   : > { %238 = vmatpush.msra.mxu0 %v201_v17 }
  0x2f   : > { %239 = vmatmul.f32.vlgmr.msra.gmra.mxu0 %v200_v18 }
  0x80   : > { %v221_v19 = vpop.permute.xlu0 %220 }
  0xac   : > { %v240_v20 = vpop.f32.mrf.mxu0 }
  0xad   : > { %v241_v21 = vadd.f32 %v240_v20, %v221_v19 }
  0xaf   : > { %244 = vst.msk [vmem:[%s199_s27] sm:$0x3f] %vm243_vm0, %v241_v21 }
  0xb0 PF: > { %s13_s14 = sadd.s32 1, %s381_s14   ;;  %s469_s12 = smov %s377_s13 }
  0xb1   : > { %p10_p5 = scmp.ge.s32.totalorder %s13_s14, 4   ;;  %s470_s13 = smov %s472_s15 }
  0xb3   :  { %12 = sbr.rel (!%p10_p5) target bundleno = 2 (0x2), region = 62 }

</bundles_post_ra>
